<compile_context>
chip_gen: v7x
topology: tpu7x:2x2x1
jax: 0.10.0
libtpu: 0.0.40
codegen_flags: <defaults>
</compile_context>

<pallas_src>
import functools

import jax
import jax.numpy as jnp
from jax.experimental import pallas as pl
from jax.experimental.pallas import tpu as pltpu


# --------------------------------------------------------------------------
# Kernel: one node-tile of scores   sc[b, n] = <h[b, n, :], v[b, :]> + bias
# --------------------------------------------------------------------------
def _score_kernel(has_sbias, *refs):
    if has_sbias:
        v_ref, bias_ref, h_ref, sb_ref, o_ref = refs
    else:
        v_ref, bias_ref, h_ref, o_ref = refs

    v = v_ref[...].astype(jnp.float32)            # (B, n_h)   resident
    h = h_ref[...].astype(jnp.float32)            # (B, TN, n_h) streamed

    # VPU multiply + lane reduce (XLU).  Cheap relative to the h DMA stream.
    sc = jnp.sum(h * v[:, None, :], axis=-1)      # (B, TN)
    sc = sc + bias_ref[0, 0]                      # scalar Bilinear bias (SMEM)
    if has_sbias:
        sc = sc + sb_ref[...].astype(jnp.float32)

    o_ref[...] = sc.astype(o_ref.dtype)


# --------------------------------------------------------------------------
# Tiling helper: keep a double-buffered h tile comfortably inside VMEM on all
# of v5e / v6e / v7x (budget ~4 MiB per live h buffer).
# --------------------------------------------------------------------------
def _choose_node_tile(B, N, n_h, dtype_bytes, budget_bytes=4 * 1024 * 1024):
    tn = budget_bytes // max(1, B * n_h * dtype_bytes)
    tn = max(128, min((tn // 128) * 128, 2048))
    if N <= tn:
        # Single tile covering the full node axis (block == full array dims).
        return N, 1, N
    n_pad = ((N + tn - 1) // tn) * tn
    return tn, n_pad // tn, n_pad


# --------------------------------------------------------------------------
# One bilinear-score stream:  (B, N, n_h) h  x  (B, n_h) v  ->  (B, N) scores
# --------------------------------------------------------------------------
def _bilinear_scores(v, h, bias, s_bias=None):
    B, N, n_h = h.shape
    dtype_bytes = jnp.dtype(h.dtype).itemsize
    tn, grid_n, n_pad = _choose_node_tile(B, N, n_h, dtype_bytes)

    if n_pad != N:
        h = jnp.pad(h, ((0, 0), (0, n_pad - N), (0, 0)))
        if s_bias is not None:
            s_bias = jnp.pad(s_bias, ((0, 0), (0, n_pad - N)))

    in_specs = [
        pl.BlockSpec((B, n_h), lambda i: (0, 0)),           # v: resident
        pl.BlockSpec(memory_space=pltpu.SMEM),              # bias scalar
        pl.BlockSpec((B, tn, n_h), lambda i: (0, i, 0)),    # h: streamed
    ]
    args = [v, bias, h]
    has_sbias = s_bias is not None
    if has_sbias:
        in_specs.append(pl.BlockSpec((B, tn), lambda i: (0, i)))
        args.append(s_bias)

    out = pl.pallas_call(
        functools.partial(_score_kernel, has_sbias),
        out_shape=jax.ShapeDtypeStruct((B, n_pad), jnp.float32),
        grid=(grid_n,),
        in_specs=in_specs,
        out_specs=pl.BlockSpec((B, tn), lambda i: (0, i)),
        compiler_params=pltpu.CompilerParams(
            dimension_semantics=("parallel",),        # megacore on v7x
            vmem_limit_bytes=32 * 1024 * 1024,        # safe on v5e/v6e/v7x
        ),
    )(*args)

    return out[:, :N]


# --------------------------------------------------------------------------
# Public forward: mirrors Discriminator.forward
# --------------------------------------------------------------------------
def discriminator_forward(c, h_pl, h_anomaly, weight, bias,
                          s_bias1=None, s_bias2=None):
    """Pallas equivalent of Discriminator.forward.

    c:          (B, n_h)
    h_pl:       (B, N1, n_h)
    h_anomaly:  (B, N2, n_h)
    weight:     (n_h, n_h)   -- nn.Bilinear weight with out_features dim dropped
    bias:       (1, 1)       -- nn.Bilinear bias (reference init: 0.0)
    returns logits: (B, N1 + N2) float32
    """
    B, n_h = c.shape
    N1 = h_pl.shape[1]

    # Tiny (B, n_h) x (n_h, n_h) matmul done once in the wrapper so the kernel
    # pipeline is pure h-streaming (W never enters the per-tile DMA stream).
    v = jnp.einsum("bj,ij->bi", c.astype(jnp.float32),
                   weight.astype(jnp.float32))                  # (B, n_h)
    bias = jnp.asarray(bias, jnp.float32).reshape(1, 1)

    sb1 = None
    if s_bias1 is not None:
        sb1 = jnp.broadcast_to(jnp.asarray(s_bias1, jnp.float32), (B, N1))

    sc_1 = _bilinear_scores(v, h_pl, bias, sb1)        # (B, N1), s_bias1 folded
    sc_3 = _bilinear_scores(v, h_anomaly, bias, None)  # (B, N2)

    # s_bias2 is accepted but unused, matching the PyTorch reference forward.
    return jnp.concatenate([sc_1, sc_3], axis=1)


def _xavier_uniform(key, shape):
    # Approximation of torch.nn.init.xavier_uniform_ on a (1, n_h, n_h)
    # Bilinear weight (synthetic deterministic init for the demo).
    fan_out, fan_in = shape[0] * shape[2], shape[1] * shape[2]
    limit = (6.0 / (fan_in + fan_out)) ** 0.5
    return jax.random.uniform(key, shape, jnp.float32, -limit, limit)


if __name__ == "__main__":
    key = jax.random.PRNGKey(0)
    k_w, k_c, k_pl, k_an, k_sb = jax.random.split(key, 5)

    B, n_h, N1, N2 = 2, 32, 8, 8

    # Parameters (deterministic, synthetic init; bias filled with 0 like torch).
    weight = _xavier_uniform(k_w, (1, n_h, n_h))[0]          # (n_h, n_h)
    bias = jnp.zeros((1, 1), jnp.float32)

    # Inputs.
    c = jax.random.normal(k_c, (B, n_h), jnp.float32)
    h_pl = jax.random.normal(k_pl, (B, N1, n_h), jnp.float32)
    h_anomaly = jax.random.normal(k_an, (B, N2, n_h), jnp.float32)

    # --- run without s_bias1 ---
    logits = discriminator_forward(c, h_pl, h_anomaly, weight, bias)
    logits = jax.block_until_ready(logits)

    # Pure-JAX reference (bilinear form).
    v_ref = jnp.einsum("ij,bj->bi", weight, c)
    sc1_ref = jnp.einsum("bni,bi->bn", h_pl, v_ref) + bias[0, 0]
    sc3_ref = jnp.einsum("bni,bi->bn", h_anomaly, v_ref) + bias[0, 0]
    ref = jnp.concatenate([sc1_ref, sc3_ref], axis=1)
    assert logits.shape == (B, N1 + N2)
    assert jnp.allclose(logits, ref, atol=1e-4, rtol=1e-4)

    # --- run with s_bias1 (exercises the folded-bias kernel path) ---
    s_bias1 = jax.random.normal(k_sb, (B, N1), jnp.float32)
    logits_sb = jax.block_until_ready(
        discriminator_forward(c, h_pl, h_anomaly, weight, bias, s_bias1=s_bias1))
    ref_sb = jnp.concatenate([sc1_ref + s_bias1, sc3_ref], axis=1)
    assert jnp.allclose(logits_sb, ref_sb, atol=1e-4, rtol=1e-4)

    print("KERNEL_OK")
</pallas_src>

<mosaic_0001>
module attributes {stable_mosaic.version = 11 : i64} {
  func.func @_score_kernel(%arg0: i32, %arg1: memref<2x32xf32, #tpu.memory_space<vmem>>, %arg2: memref<1x1xf32, #tpu.memory_space<smem>>, %arg3: memref<2x8x32xf32, #tpu.memory_space<vmem>>, %arg4: memref<2x8xf32, #tpu.memory_space<vmem>>) attributes {dimension_semantics = [#tpu.dimension_semantics<parallel>], iteration_bounds = array<i64: 1>, scalar_prefetch = 0 : i64, scratch_operands = 0 : i64, tpu.core_type = #tpu.core_type<tc>, window_params = [{pipeline_mode = #tpu.pipeline_mode<synchronous>, transform_indices = @transform_0, window_bounds = array<i64: 2, 32>}, {transform_indices = @transform_1, window_bounds = array<i64: 1, 1>}, {transform_indices = @transform_2, window_bounds = array<i64: 2, 8, 32>}, {transform_indices = @transform_3, window_bounds = array<i64: 2, 8>}]} {
    %c0 = arith.constant 0 : index
    %c0_0 = arith.constant 0 : index
    %0 = vector.load %arg1[%c0, %c0_0] : memref<2x32xf32, #tpu.memory_space<vmem>>, vector<2x32xf32>
    %c0_1 = arith.constant 0 : index
    %c0_2 = arith.constant 0 : index
    %c0_3 = arith.constant 0 : index
    %1 = vector.load %arg3[%c0_1, %c0_2, %c0_3] : memref<2x8x32xf32, #tpu.memory_space<vmem>>, vector<2x8x32xf32>
    %2 = vector.shape_cast %0 : vector<2x32xf32> to vector<2x1x32xf32>
    %3 = vector.broadcast %2 : vector<2x1x32xf32> to vector<2x8x32xf32>
    %4 = arith.mulf %1, %3 : vector<2x8x32xf32>
    %cst = arith.constant dense<0.000000e+00> : vector<2x8xf32>
    %5 = vector.multi_reduction <add>, %4, %cst [2] : vector<2x8x32xf32> to vector<2x8xf32>
    %c0_4 = arith.constant 0 : index
    %c0_5 = arith.constant 0 : index
    %6 = memref.load %arg2[%c0_4, %c0_5] : memref<1x1xf32, #tpu.memory_space<smem>>
    %7 = vector.broadcast %6 : f32 to vector<2x8xf32>
    %8 = arith.addf %5, %7 : vector<2x8xf32>
    %c0_6 = arith.constant 0 : index
    %c0_7 = arith.constant 0 : index
    %9 = vector.load %arg4[%c0_6, %c0_7] : memref<2x8xf32, #tpu.memory_space<vmem>>, vector<2x8xf32>
    tpu.vector_store %arg4[%c0_6, %c0_7], %8 {strides = array<i32>} : memref<2x8xf32, #tpu.memory_space<vmem>>, vector<2x8xf32>,
    return
  }
  func.func @transform_0(%arg0: i32) -> (i32, i32) {
    %c0_i32 = arith.constant 0 : i32
    %c0_i32_0 = arith.constant 0 : i32
    %c0_i32_1 = arith.constant 0 : i32
    return %c0_i32, %c0_i32_0 : i32, i32
  }
  func.func @transform_1(%arg0: i32) -> (i32, i32) {
    %c0_i32 = arith.constant 0 : i32
    %c0_i32_0 = arith.constant 0 : i32
    %c0_i32_1 = arith.constant 0 : i32
    return %c0_i32, %c0_i32_0 : i32, i32
  }
  func.func @transform_2(%arg0: i32) -> (i32, i32, i32) {
    %c0_i32 = arith.constant 0 : i32
    %c0_i32_0 = arith.constant 0 : i32
    %c0_i32_1 = arith.constant 0 : i32
    return %c0_i32, %arg0, %c0_i32_0 : i32, i32, i32
  }
  func.func @transform_3(%arg0: i32) -> (i32, i32) {
    %c0_i32 = arith.constant 0 : i32
    %c0_i32_0 = arith.constant 0 : i32
    return %c0_i32, %arg0 : i32, i32
  }
}

</mosaic_0001>

<bundles_post_ra>
// kernel: tpu_custom_call.1
= control target key start
LH: loop header
LB: loop body
LE: loop exit
PB: predicated region body
PF: predicated region fallthrough
CT: control target
= control target key end

     0   :  { %9 = vsyncpa [#allocation4], 0  ;;  %s220_s0 = inlined_call_operand.vmem [shape: f32[2,32], index: 0, kind: input, shape index: {}]   ;;  %s221_s1 = inlined_call_operand.<no memory space> [shape: f32[1,1], index: 1, kind: input, shape index: {}]   ;;  %s222_s2 = inlined_call_operand.hbm [shape: f32[2,8,32], index: 2, kind: input, shape index: {}]   ;;  %s223_s3 = inlined_call_operand.hbm [shape: f32[2,8], index: 3, kind: output, shape index: {}]  }
   0x1   :  { %10 = vsyncpa [#allocation5], 0  ;;  %s165_s12 = smov [#allocation3]   ;;  %s117_s16 = scalar_lea.hbm %s222_s2, 256 }
   0x2   :  { %s20_s13 = sshll.u32 %s165_s12, 4  ;;  %p118_p0 = scmp.ne.s32.totalorder %s222_s2, %s117_s16  ;;  %s21_s13 = int_to_ptr.vmem [resolvable:$true] %s20_s13 }
   0x3   :  { %p121_p1 = scmp.lt.u32.totalorder %s117_s16, %s222_s2 }
   0x5   :  { %p123_p2 = pnand %p121_p1, %p118_p0 }
   0x7   :  { %126 = shalt.err (!%p123_p2)
}
   0x8   :  { %s127_s21 = scalar_lea.vmem %s21_s13, 256  ;;  %p132_p4 = scmp.lt.s32.totalorder %s21_s13, %s21_s13 }
   0x9   :  { %p128_p3 = scmp.ne.s32.totalorder %s21_s13, %s127_s21  ;;  %p133_p5 = scmp.lt.s32.totalorder %s127_s21, %s127_s21 }
   0xb   :  { %p134_p6 = por %p133_p5, %p132_p4 }
   0xd   :  { %p135_p7 = pnand %p134_p6, %p128_p3 }
   0xf   :  { %138 = shalt.err (!%p135_p7)
}
  0x10   :  { %s166_s22 = smov 128   ;;  %s167_s23 = smov 8  }
  0x11   :  { %26 = dma.hbm_to_vmem [thread:$0]  %s222_s2, 256, %s21_s13, [#allocation4], %s166_s22, %s166_s22, %s167_s23  }
  0x12   :  { %161 = dma.done.wait [#allocation4], 256  }
  0x13   :  { %162 = vsyncadd [#allocation4], 4294967040  ;;  %v45_v0 = vlaneseq  ;;  %v168_v1 = vmov 1966171168   ;;  %v31_v12 = vld [vmem:[#allocation3] sm:$0xff]  ;;  %vm68_vm0 = vcmask 261120   ;;  %v76_v21 = vstv %s221_s1 }
  0x14   :  { %v43_v2 = vunpack.c.l.s4 %v168_v1  ;;  %v111_v9 = vld.sshfl [vmem:[%s220_s0] sm:$0x11 pattern:$0x75316420]  ;;  %v32_v15 = vld [vmem:[#allocation3 + $0x8] sm:$0xff]  ;;  %s169_s0 = smov [#allocation6]  }
  0x15   :  { %v46_v3 = vshrl.u32 %v45_v0, 7  ;;  %v82_v4 = vand.u32 127, %v45_v0  ;;  %v41_v11 = vcombine.high %v111_v9, %v111_v9  ;;  %s102_s29 = sshll.u32 %s169_s0, 4  ;;  %vm91_vm1 = vcmask 1041409   ;;  %s103_s29 = int_to_ptr.vmem [resolvable:$true] %s102_s29 }
  0x16   :  { %v44_v5 = vunpack.c.0.s8 %v43_v2  ;;  %vm94_vm2 = vcmask 58368   ;;  %s139_s30 = scalar_lea.vmem %s103_s29, 32  ;;  %p144_p9 = scmp.lt.s32.totalorder %s103_s29, %s103_s29 }
  0x17   :  { %v85_v6 = vsub.s32 %v82_v4, %v46_v3  ;;  %v58_v8 = vsub.s32 0, %v46_v3  ;;  %p140_p8 = scmp.ne.s32.totalorder %s103_s29, %s139_s30  ;;  %p145_p10 = scmp.lt.s32.totalorder %s139_s30, %s139_s30 }
  0x18   :  { %v47_v7 = vsub.s32 %v44_v5, %v46_v3 }
  0x19   :  { %p146_p11 = por %p145_p10, %p144_p9 }
  0x1a   :  { %v48_v10 = vrot.slane %v111_v9, %v47_v7  ;;  %v55_v14 = vrot.slane %v41_v11, %v47_v7 }
  0x1b   :  { %p147_p12 = pnand %p146_p11, %p140_p8 }
  0x1c   :  { %v59_v13 = vrot.slane %v48_v10, %v58_v8  ;;  %v63_v17 = vrot.slane %v55_v14, %v58_v8 }
  0x1e   :  { %v66_v16 = vmul.f32 %v59_v13, %v31_v12  ;;  %v67_v19 = vmul.f32 %v63_v17, %v32_v15 }
  0x20   :  { %v69_v18 = vsel %vm68_vm0, %v66_v16, 0.0  ;;  %v72_v20 = vsel %vm68_vm0, %v67_v19, 0.0 }
  0x21   :  { %70 = vadd.xlane.f32.xlu0 %v69_v18 }
  0x25   :  { %73 = vadd.xlane.f32.xlu0 %v72_v20 }
  0xae   :  { %v71_v22 = vpop.xlane.xlu0 %70 }
  0xaf   :  { %v77_v23 = vadd.f32 %v76_v21, %v71_v22 }
  0xb1   :  { %v86_v26 = vrot.slane %v77_v23, %v85_v6 }
  0xb2   :  { %v74_v24 = vpop.xlane.xlu0 %73 }
  0xb3   :  { %v78_v25 = vadd.f32 %v76_v21, %v74_v24 }
  0xb5   :  { %v90_v27 = vrot.slane %v78_v25, %v85_v6 }
  0xb7   :  { %v92_v28 = vsel %vm91_vm1, %v90_v27, %v86_v26 }
  0xb8   :  { %95 = vst.msk [vmem:[#allocation6] sm:$0x3] %vm94_vm2, %v92_v28 }
  0xb9   :  { %150 = shalt.err (!%p147_p12)
}
  0xba   :  { %s151_s5 = scalar_lea.hbm %s223_s3, 32 }
  0xbb   :  { %p152_p13 = scmp.ne.s32.totalorder %s223_s3, %s151_s5  ;;  %p155_p0 = scmp.lt.u32.totalorder %s151_s5, %s223_s3 }
  0xbd   :  { %p157_p1 = pnand %p155_p0, %p152_p13 }
  0xbf   :  { %160 = shalt.err (!%p157_p1)
}
  0xc0   :  { %105 = dma.vmem_to_hbm [thread:$0]  %s103_s29, 32, %s223_s3, [#allocation5]  }
  0xc1   :  { %163 = dma.done.wait [#allocation5], 32  }
  0xc2   :  { %164 = vsyncadd [#allocation5], 4294967264 }
  0xc3   :  { %109 = vsyncpa [#allocation4], 1 }
  0xc4   :  { %110 = vsyncpa [#allocation5], 1 }

</bundles_post_ra>
